<compile_context>
chip_gen: v6e
topology: v6e:2x2x1
jax: 0.10.0
libtpu: 0.0.40
codegen_flags: <defaults>
</compile_context>

<pallas_src>
import functools

import jax
import jax.numpy as jnp
from jax.experimental import pallas as pl
from jax.experimental.pallas import tpu as pltpu

_LANE = 128
_ROW_ALIGN = 16          # bf16 sublane packing: keep batch tiles multiples of 16
_MIN_SPLIT_ROWS = 512    # split a single-tile grid in two above this (v7x: 2 TCs)


def _round_up(x, m):
    return ((x + m - 1) // m) * m


def _dueling_q_kernel(s_ref, w1_ref, b1_ref, w2_ref, b2_ref, w3_ref, b3_ref,
                      out_ref, psum_ref, *, n_actions, batch, tile_rows):
    # Cast the f32 input tile to bf16 on the VPU (free slot); MXU runs bf16.
    s = s_ref[...].astype(jnp.bfloat16)

    # Layer 1: fused [adv | val] heads, output lanes zero-padded to 128.
    h1 = jnp.dot(s, w1_ref[...], preferred_element_type=jnp.float32) + b1_ref[...]
    h1 = jnp.maximum(h1, 0.0).astype(jnp.bfloat16)

    # Layer 2: block-diagonal fused [adv | val].
    h2 = jnp.dot(h1, w2_ref[...], preferred_element_type=jnp.float32) + b2_ref[...]
    h2 = jnp.maximum(h2, 0.0).astype(jnp.bfloat16)

    # Layer 3: dueling combine folded into the weights.
    #   lanes [0, A): adv_j + val      lane A: sum_j adv_j      rest: 0
    q = jnp.dot(h2, w3_ref[...], preferred_element_type=jnp.float32) + b3_ref[...]

    # bf16 writeback of the lane-padded slab (halves HBM store traffic);
    # accumulation above stayed f32.
    out_ref[...] = q.astype(out_ref.dtype)

    # Per-tile partial sum of the adv-sum column, kept in f32 for the global
    # mean.  Padded batch rows (last tile) are masked out: zero input rows
    # still produce ReLU(bias) garbage, which must not pollute the mean.
    row_ids = (jax.lax.broadcasted_iota(jnp.int32, (tile_rows, 1), 0)
               + pl.program_id(0) * tile_rows)
    adv_sum_col = jnp.where(row_ids < batch,
                            q[:, n_actions:n_actions + 1],
                            0.0)
    psum_ref[...] = jnp.broadcast_to(jnp.sum(adv_sum_col), psum_ref.shape)


def _pack_params(params):
    """Fuse adv/val heads into three lane-padded matmuls (tiny, trace-time)."""
    wa1, ba1 = params["wa1"], params["ba1"]
    wa2, ba2 = params["wa2"], params["ba2"]
    wa3, ba3 = params["wa3"], params["ba3"]
    wv1, bv1 = params["wv1"], params["bv1"]
    wv2, bv2 = params["wv2"], params["bv2"]
    wv3, bv3 = params["wv3"], params["bv3"]

    n_states, n_hidden = wa1.shape
    half = wa2.shape[1]
    n_actions = wa3.shape[1]

    d1 = _round_up(2 * n_hidden, _LANE)
    d2 = _round_up(2 * half, _LANE)
    do = _round_up(n_actions + 1, _LANE)

    # Layer 1: [adv | val] side by side on the output lanes.
    w1 = jnp.zeros((n_states, d1), jnp.float32)
    w1 = w1.at[:, :n_hidden].set(wa1).at[:, n_hidden:2 * n_hidden].set(wv1)
    b1 = jnp.zeros((1, d1), jnp.float32)
    b1 = b1.at[:, :n_hidden].set(ba1).at[:, n_hidden:2 * n_hidden].set(bv1)

    # Layer 2: block-diagonal (adv hidden -> adv half, val hidden -> val half).
    w2 = jnp.zeros((d1, d2), jnp.float32)
    w2 = w2.at[:n_hidden, :half].set(wa2)
    w2 = w2.at[n_hidden:2 * n_hidden, half:2 * half].set(wv2)
    b2 = jnp.zeros((1, d2), jnp.float32)
    b2 = b2.at[:, :half].set(ba2).at[:, half:2 * half].set(bv2)

    # Layer 3: fold the dueling combine into the weights.
    #   column j (< A):  [wa3[:, j] ; wv3[:, 0]]  -> adv_j + val
    #   column A      :  [sum_j wa3[:, j] ; 0]    -> sum_j adv_j (for global mean)
    w3 = jnp.zeros((d2, do), jnp.float32)
    w3 = w3.at[:half, :n_actions].set(wa3)
    w3 = w3.at[half:2 * half, :n_actions].set(
        jnp.broadcast_to(wv3, (half, n_actions)))
    w3 = w3.at[:half, n_actions].set(jnp.sum(wa3, axis=1))
    b3 = jnp.zeros((1, do), jnp.float32)
    b3 = b3.at[:, :n_actions].set(ba3 + bv3)
    b3 = b3.at[:, n_actions].set(jnp.sum(ba3))

    return (w1.astype(jnp.bfloat16), b1,
            w2.astype(jnp.bfloat16), b2,
            w3.astype(jnp.bfloat16), b3,
            n_actions)


def dueling_q_forward(s, params, *, batch_tile=2048, vmem_limit_bytes=None):
    """params: dict with adv/val weights (in,out) and biases (1,out).

    batch_tile is the primary perf knob: bigger tiles amortize the ~0.5 us
    per-grid-step overhead.  The default (2048) fits comfortably inside v5e's
    ~16 MiB scoped-VMEM default; pass vmem_limit_bytes to go larger on
    v6e/v7x.
    """
    batch, n_states = s.shape
    w1, b1, w2, b2, w3, b3, n_actions = _pack_params(params)
    d1, d2, do = w1.shape[1], w2.shape[1], w3.shape[1]

    # Batch tile: aligned to 16 rows (bf16 output packing), clamped to batch.
    tb_cap = _round_up(batch, _ROW_ALIGN)
    tb = min(_round_up(batch_tile, _ROW_ALIGN), tb_cap)
    # v7x has 2 TensorCores and shards the "parallel" grid axis across them:
    # don't let a single huge tile collapse the grid to length 1 when the
    # batch is big enough to split.
    if tb == tb_cap and tb_cap >= _MIN_SPLIT_ROWS:
        tb = _round_up(pl.cdiv(tb_cap, 2), _ROW_ALIGN)

    padded_b = _round_up(batch, tb)
    num_tiles = padded_b // tb
    if padded_b != batch:
        s = jnp.pad(s, ((0, padded_b - batch), (0, 0)))
    # NOTE: s stays f32 — it is cast to bf16 inside the kernel (no extra
    # wrapper-side HBM round trip).

    cp_kwargs = dict(dimension_semantics=("parallel",))
    if vmem_limit_bytes is not None:
        cp_kwargs["vmem_limit_bytes"] = vmem_limit_bytes

    const = lambda i: (0, 0)  # weights/biases stay VMEM-resident across tiles
    kernel = functools.partial(_dueling_q_kernel,
                               n_actions=n_actions, batch=batch, tile_rows=tb)

    slab, psums = pl.pallas_call(
        kernel,
        out_shape=(
            jax.ShapeDtypeStruct((padded_b, do), jnp.bfloat16),
            jax.ShapeDtypeStruct((num_tiles, 1, _LANE), jnp.float32),
        ),
        grid_spec=pltpu.PrefetchScalarGridSpec(
            num_scalar_prefetch=0,
            grid=(num_tiles,),
            in_specs=[
                pl.BlockSpec((tb, n_states), lambda i: (i, 0)),
                pl.BlockSpec((n_states, d1), const),
                pl.BlockSpec((1, d1), const),
                pl.BlockSpec((d1, d2), const),
                pl.BlockSpec((1, d2), const),
                pl.BlockSpec((d2, do), const),
                pl.BlockSpec((1, do), const),
            ],
            out_specs=[
                pl.BlockSpec((tb, do), lambda i: (i, 0)),
                pl.BlockSpec((1, 1, _LANE), lambda i: (i, 0, 0)),
            ],
        ),
        compiler_params=pltpu.CompilerParams(**cp_kwargs),
    )(s, w1, b1, w2, b2, w3, b3)

    # Finish the GLOBAL adv mean (over batch AND actions) from the per-tile
    # f32 partial sums (O(num_tiles) read), then subtract.  Uses the unpadded
    # batch count — exact match to `val + adv - adv.mean()`.
    adv_mean = jnp.sum(psums[:, 0, 0]) / (batch * n_actions)
    return slab[:batch, :n_actions].astype(jnp.float32) - adv_mean


def init_params(key, n_states, n_actions, n_hidden):
    """Deterministic synthetic init (PyTorch-style uniform(-1/sqrt(fan_in), ...))."""
    def linear(key, fan_in, fan_out):
        kw, kb = jax.random.split(key)
        bound = 1.0 / jnp.sqrt(jnp.float32(fan_in))
        w = jax.random.uniform(kw, (fan_in, fan_out), jnp.float32, -bound, bound)
        b = jax.random.uniform(kb, (1, fan_out), jnp.float32, -bound, bound)
        return w, b

    keys = jax.random.split(key, 6)
    h2 = n_hidden // 2
    wa1, ba1 = linear(keys[0], n_states, n_hidden)
    wa2, ba2 = linear(keys[1], n_hidden, h2)
    wa3, ba3 = linear(keys[2], h2, n_actions)
    wv1, bv1 = linear(keys[3], n_states, n_hidden)
    wv2, bv2 = linear(keys[4], n_hidden, h2)
    wv3, bv3 = linear(keys[5], h2, 1)
    return dict(wa1=wa1, ba1=ba1, wa2=wa2, ba2=ba2, wa3=wa3, ba3=ba3,
                wv1=wv1, bv1=bv1, wv2=wv2, bv2=bv2, wv3=wv3, bv3=bv3)


def reference_forward(s, p):
    """Pure-f32 reference matching the PyTorch module exactly."""
    def mlp(x, w1, b1, w2, b2, w3, b3):
        h1 = jnp.maximum(x @ w1 + b1, 0.0)
        h2 = jnp.maximum(h1 @ w2 + b2, 0.0)
        return h2 @ w3 + b3
    adv = mlp(s, p["wa1"], p["ba1"], p["wa2"], p["ba2"], p["wa3"], p["ba3"])
    val = mlp(s, p["wv1"], p["bv1"], p["wv2"], p["bv2"], p["wv3"], p["bv3"])
    return val + adv - jnp.mean(adv)


if __name__ == "__main__":
    n_states, n_actions, n_hidden = 16, 4, 32
    batch = 2

    key = jax.random.PRNGKey(0)
    k_params, k_input = jax.random.split(key)

    params = init_params(k_params, n_states, n_actions, n_hidden)
    s = jax.random.normal(k_input, (batch, n_states), jnp.float32)

    out = jax.block_until_ready(dueling_q_forward(s, params))
    ref = reference_forward(s, params)

    assert out.shape == (batch, n_actions)
    # bf16 weights/activations + bf16 slab vs pure-f32 reference -> loose tol.
    assert jnp.allclose(out, ref, atol=5e-2, rtol=5e-2), (
        float(jnp.max(jnp.abs(out - ref))))

    print("KERNEL_OK")
</pallas_src>

<mosaic_0001>
module attributes {stable_mosaic.version = 11 : i64} {
  func.func @_dueling_q_kernel(%arg0: i32, %arg1: memref<16x16xf32, #tpu.memory_space<vmem>>, %arg2: memref<16x128xbf16, #tpu.memory_space<vmem>>, %arg3: memref<1x128xf32, #tpu.memory_space<vmem>>, %arg4: memref<128x128xbf16, #tpu.memory_space<vmem>>, %arg5: memref<1x128xf32, #tpu.memory_space<vmem>>, %arg6: memref<128x128xbf16, #tpu.memory_space<vmem>>, %arg7: memref<1x128xf32, #tpu.memory_space<vmem>>, %arg8: memref<16x128xbf16, #tpu.memory_space<vmem>>, %arg9: memref<1x1x128xf32, #tpu.memory_space<vmem>>) attributes {dimension_semantics = [#tpu.dimension_semantics<parallel>], iteration_bounds = array<i64: 1>, scalar_prefetch = 0 : i64, scratch_operands = 0 : i64, tpu.core_type = #tpu.core_type<tc>, window_params = [{transform_indices = @transform_0, window_bounds = array<i64: 16, 16>}, {pipeline_mode = #tpu.pipeline_mode<synchronous>, transform_indices = @transform_1, window_bounds = array<i64: 16, 128>}, {pipeline_mode = #tpu.pipeline_mode<synchronous>, transform_indices = @transform_2, window_bounds = array<i64: 1, 128>}, {pipeline_mode = #tpu.pipeline_mode<synchronous>, transform_indices = @transform_3, window_bounds = array<i64: 128, 128>}, {pipeline_mode = #tpu.pipeline_mode<synchronous>, transform_indices = @transform_4, window_bounds = array<i64: 1, 128>}, {pipeline_mode = #tpu.pipeline_mode<synchronous>, transform_indices = @transform_5, window_bounds = array<i64: 128, 128>}, {pipeline_mode = #tpu.pipeline_mode<synchronous>, transform_indices = @transform_6, window_bounds = array<i64: 1, 128>}, {transform_indices = @transform_7, window_bounds = array<i64: 16, 128>}, {transform_indices = @transform_8, window_bounds = array<i64: 1, 1, 128>}]} {
    %c0 = arith.constant 0 : index
    %c0_0 = arith.constant 0 : index
    %0 = vector.load %arg1[%c0, %c0_0] : memref<16x16xf32, #tpu.memory_space<vmem>>, vector<16x16xf32>
    %1 = arith.truncf %0 : vector<16x16xf32> to vector<16x16xbf16>
    %c0_1 = arith.constant 0 : index
    %c0_2 = arith.constant 0 : index
    %2 = vector.load %arg2[%c0_1, %c0_2] : memref<16x128xbf16, #tpu.memory_space<vmem>>, vector<16x128xbf16>
    %cst = arith.constant dense<0.000000e+00> : vector<16x128xf32>
    %3 = tpu.matmul %1, %2, %cst {dimension_numbers = #tpu.dot_dimension_numbers<[1], [0], [0], [1], [0, 0, 1, 1], [], []>} : vector<16x16xbf16>, vector<16x128xbf16>, vector<16x128xf32> -> vector<16x128xf32>
    %c0_3 = arith.constant 0 : index
    %c0_4 = arith.constant 0 : index
    %4 = vector.load %arg3[%c0_3, %c0_4] : memref<1x128xf32, #tpu.memory_space<vmem>>, vector<1x128xf32>
    %5 = vector.broadcast %4 : vector<1x128xf32> to vector<16x128xf32>
    %6 = arith.addf %3, %5 : vector<16x128xf32>
    %cst_5 = arith.constant 0.000000e+00 : f32
    %7 = vector.broadcast %cst_5 : f32 to vector<16x128xf32>
    %8 = arith.maximumf %6, %7 : vector<16x128xf32>
    %9 = arith.truncf %8 : vector<16x128xf32> to vector<16x128xbf16>
    %c0_6 = arith.constant 0 : index
    %c0_7 = arith.constant 0 : index
    %10 = vector.load %arg4[%c0_6, %c0_7] : memref<128x128xbf16, #tpu.memory_space<vmem>>, vector<128x128xbf16>
    %cst_8 = arith.constant dense<0.000000e+00> : vector<16x128xf32>
    %11 = tpu.matmul %9, %10, %cst_8 {dimension_numbers = #tpu.dot_dimension_numbers<[1], [0], [0], [1], [0, 0, 1, 1], [], []>} : vector<16x128xbf16>, vector<128x128xbf16>, vector<16x128xf32> -> vector<16x128xf32>
    %c0_9 = arith.constant 0 : index
    %c0_10 = arith.constant 0 : index
    %12 = vector.load %arg5[%c0_9, %c0_10] : memref<1x128xf32, #tpu.memory_space<vmem>>, vector<1x128xf32>
    %13 = vector.broadcast %12 : vector<1x128xf32> to vector<16x128xf32>
    %14 = arith.addf %11, %13 : vector<16x128xf32>
    %cst_11 = arith.constant 0.000000e+00 : f32
    %15 = vector.broadcast %cst_11 : f32 to vector<16x128xf32>
    %16 = arith.maximumf %14, %15 : vector<16x128xf32>
    %17 = arith.truncf %16 : vector<16x128xf32> to vector<16x128xbf16>
    %c0_12 = arith.constant 0 : index
    %c0_13 = arith.constant 0 : index
    %18 = vector.load %arg6[%c0_12, %c0_13] : memref<128x128xbf16, #tpu.memory_space<vmem>>, vector<128x128xbf16>
    %cst_14 = arith.constant dense<0.000000e+00> : vector<16x128xf32>
    %19 = tpu.matmul %17, %18, %cst_14 {dimension_numbers = #tpu.dot_dimension_numbers<[1], [0], [0], [1], [0, 0, 1, 1], [], []>} : vector<16x128xbf16>, vector<128x128xbf16>, vector<16x128xf32> -> vector<16x128xf32>
    %c0_15 = arith.constant 0 : index
    %c0_16 = arith.constant 0 : index
    %20 = vector.load %arg7[%c0_15, %c0_16] : memref<1x128xf32, #tpu.memory_space<vmem>>, vector<1x128xf32>
    %21 = vector.broadcast %20 : vector<1x128xf32> to vector<16x128xf32>
    %22 = arith.addf %19, %21 : vector<16x128xf32>
    %23 = arith.truncf %22 : vector<16x128xf32> to vector<16x128xbf16>
    %c0_17 = arith.constant 0 : index
    %c0_18 = arith.constant 0 : index
    %24 = vector.load %arg8[%c0_17, %c0_18] : memref<16x128xbf16, #tpu.memory_space<vmem>>, vector<16x128xbf16>
    tpu.vector_store %arg8[%c0_17, %c0_18], %23 {strides = array<i32>} : memref<16x128xbf16, #tpu.memory_space<vmem>>, vector<16x128xbf16>,
    %25 = tpu.iota {dimensions = array<i32: 0>} : vector<16x1xi32>
    %c16_i32 = arith.constant 16 : i32
    %26 = arith.muli %arg0, %c16_i32 : i32
    %27 = vector.broadcast %26 : i32 to vector<16x1xi32>
    %28 = arith.addi %25, %27 : vector<16x1xi32>
    %c2_i32 = arith.constant 2 : i32
    %29 = vector.broadcast %c2_i32 : i32 to vector<16x1xi32>
    %30 = arith.cmpi slt, %28, %29 : vector<16x1xi32>
    %31 = vector.extract_strided_slice %22 {offsets = [0, 4], sizes = [16, 1], strides = [1, 1]} : vector<16x128xf32> to vector<16x1xf32>
    %cst_19 = arith.constant 0.000000e+00 : f32
    %32 = vector.broadcast %cst_19 : f32 to vector<16x1xf32>
    %33 = arith.select %30, %31, %32 : vector<16x1xi1>, vector<16x1xf32>
    %34 = vector.shape_cast %33 : vector<16x1xf32> to vector<1x16x1xf32>
    %cst_20 = arith.constant dense<0.000000e+00> : vector<1xf32>
    %35 = vector.multi_reduction <add>, %34, %cst_20 [1, 2] : vector<1x16x1xf32> to vector<1xf32>
    %36 = vector.shape_cast %35 : vector<1xf32> to vector<1x1x1xf32>
    %37 = vector.extract %36[0, 0, 0] : f32 from vector<1x1x1xf32>
    %38 = vector.broadcast %37 : f32 to vector<1x1x128xf32>
    %c0_21 = arith.constant 0 : index
    %c0_22 = arith.constant 0 : index
    %c0_23 = arith.constant 0 : index
    %39 = vector.load %arg9[%c0_21, %c0_22, %c0_23] : memref<1x1x128xf32, #tpu.memory_space<vmem>>, vector<1x1x128xf32>
    tpu.vector_store %arg9[%c0_21, %c0_22, %c0_23], %38 {strides = array<i32>} : memref<1x1x128xf32, #tpu.memory_space<vmem>>, vector<1x1x128xf32>,
    return
  }
  func.func @transform_0(%arg0: i32) -> (i32, i32) {
    %c0_i32 = arith.constant 0 : i32
    %c0_i32_0 = arith.constant 0 : i32
    return %arg0, %c0_i32 : i32, i32
  }
  func.func @transform_1(%arg0: i32) -> (i32, i32) {
    %c0_i32 = arith.constant 0 : i32
    %c0_i32_0 = arith.constant 0 : i32
    %c0_i32_1 = arith.constant 0 : i32
    return %c0_i32, %c0_i32_0 : i32, i32
  }
  func.func @transform_2(%arg0: i32) -> (i32, i32) {
    %c0_i32 = arith.constant 0 : i32
    %c0_i32_0 = arith.constant 0 : i32
    %c0_i32_1 = arith.constant 0 : i32
    return %c0_i32, %c0_i32_0 : i32, i32
  }
  func.func @transform_3(%arg0: i32) -> (i32, i32) {
    %c0_i32 = arith.constant 0 : i32
    %c0_i32_0 = arith.constant 0 : i32
    %c0_i32_1 = arith.constant 0 : i32
    return %c0_i32, %c0_i32_0 : i32, i32
  }
  func.func @transform_4(%arg0: i32) -> (i32, i32) {
    %c0_i32 = arith.constant 0 : i32
    %c0_i32_0 = arith.constant 0 : i32
    %c0_i32_1 = arith.constant 0 : i32
    return %c0_i32, %c0_i32_0 : i32, i32
  }
  func.func @transform_5(%arg0: i32) -> (i32, i32) {
    %c0_i32 = arith.constant 0 : i32
    %c0_i32_0 = arith.constant 0 : i32
    %c0_i32_1 = arith.constant 0 : i32
    return %c0_i32, %c0_i32_0 : i32, i32
  }
  func.func @transform_6(%arg0: i32) -> (i32, i32) {
    %c0_i32 = arith.constant 0 : i32
    %c0_i32_0 = arith.constant 0 : i32
    %c0_i32_1 = arith.constant 0 : i32
    return %c0_i32, %c0_i32_0 : i32, i32
  }
  func.func @transform_7(%arg0: i32) -> (i32, i32) {
    %c0_i32 = arith.constant 0 : i32
    %c0_i32_0 = arith.constant 0 : i32
    return %arg0, %c0_i32 : i32, i32
  }
  func.func @transform_8(%arg0: i32) -> (i32, i32, i32) {
    %c0_i32 = arith.constant 0 : i32
    %c0_i32_0 = arith.constant 0 : i32
    %c0_i32_1 = arith.constant 0 : i32
    return %arg0, %c0_i32, %c0_i32_0 : i32, i32, i32
  }
}

</mosaic_0001>

<bundles_post_ra>
// kernel: tpu_custom_call.1
= control target key start
LH: loop header
LB: loop body
LE: loop exit
PB: predicated region body
PF: predicated region fallthrough
CT: control target
= control target key end

     0   :  { %14 = vsyncpa [#allocation3], 0  ;;  %s835_s0 = inlined_call_operand.hbm [shape: f32[16,16], index: 0, kind: input, shape index: {}]   ;;  %s836_s1 = inlined_call_operand.hbm [shape: bf16[16,128], index: 1, kind: input, shape index: {}]   ;;  %s837_s2 = inlined_call_operand.vmem [shape: f32[1,128], index: 2, kind: input, shape index: {}]   ;;  %s838_s3 = inlined_call_operand.hbm [shape: bf16[128,128], index: 3, kind: input, shape index: {}]   ;;  %s839_s4 = inlined_call_operand.vmem [shape: f32[1,128], index: 4, kind: input, shape index: {}]   ;;  %s840_s5 = inlined_call_operand.hbm [shape: bf16[128,128], index: 5, kind: input, shape index: {}]   ;;  %s841_s6 = inlined_call_operand.vmem [shape: f32[1,128], index: 6, kind: input, shape index: {}]   ;;  %s842_s7 = inlined_call_operand.hbm [shape: bf16[16,128], index: 7, kind: output, shape index: {0}]   ;;  %s843_s8 = inlined_call_operand.hbm [shape: f32[1,1,128], index: 8, kind: output, shape index: {1}]  }
   0x1   :  { %15 = vsyncpa [#allocation6], 0 }
   0x2   :  { %16 = vsyncpa [#allocation9], 0 }
   0x3   :  { %17 = vsyncpa [#allocation4], 0 }
   0x4   :  { %18 = vsyncpa [#allocation12], 0  ;;  %s714_s27 = smov [#allocation5]  }
   0x5   :  { %s36_s28 = sshll.u32 %s714_s27, 4  ;;  %s37_s28 = int_to_ptr.vmem [resolvable:$true] %s36_s28 }
   0x6   :  { %s592_s29 = scalar_lea.vmem %s37_s28, 128  ;;  %p597_p1 = scmp.lt.s32.totalorder %s37_s28, %s37_s28 }
   0x7   :  { %p593_p0 = scmp.ne.s32.totalorder %s37_s28, %s592_s29  ;;  %p598_p2 = scmp.lt.s32.totalorder %s592_s29, %s592_s29 }
   0x9   :  { %p599_p3 = por %p598_p2, %p597_p1 }
   0xb   :  { %p600_p4 = pnand %p599_p3, %p593_p0 }
   0xd   :  { %603 = shalt.err (!%p600_p4)
}
   0xe   :  { %s715_s30 = smov 64   ;;  %s716_s9 = smov 4  }
   0xf   :  { %42 = dma.hbm_to_vmem [thread:$0]  %s836_s1, 128, %s37_s28, [#allocation6], %s715_s30, %s715_s30, %s716_s9  }
  0x10   :  { %s717_s12 = smov [#allocation2]  }
  0x11   :  { %s24_s13 = sshll.u32 %s717_s12, 4  ;;  %s25_s13 = int_to_ptr.vmem [resolvable:$true] %s24_s13 }
  0x12   :  { %s612_s14 = scalar_lea.vmem %s25_s13, 256  ;;  %p617_p6 = scmp.lt.s32.totalorder %s25_s13, %s25_s13 }
  0x13   :  { %p613_p5 = scmp.ne.s32.totalorder %s25_s13, %s612_s14  ;;  %p618_p7 = scmp.lt.s32.totalorder %s612_s14, %s612_s14 }
  0x15   :  { %p619_p8 = por %p618_p7, %p617_p6 }
  0x17   :  { %p620_p9 = pnand %p619_p8, %p613_p5 }
  0x19   :  { %623 = shalt.err (!%p620_p9)
}
  0x1a   :  { %s718_s15 = smov 128   ;;  %s719_s16 = smov 8  }
  0x1b   :  { %30 = dma.hbm_to_vmem [thread:$0]  %s835_s0, 256, %s25_s13, [#allocation3], %s718_s15, %s718_s15, %s719_s16  }
  0x1c   :  { %s720_s19 = smov [#allocation7]   ;;  %s721_s21 = smov [#allocation8]  }
  0x1d   :  { %s50_s20 = sshll.u32 %s720_s19, 4  ;;  %s64_s1 = sshll.u32 %s721_s21, 4  ;;  %s51_s20 = int_to_ptr.vmem [resolvable:$true] %s50_s20  ;;  %s65_s1 = int_to_ptr.vmem [resolvable:$true] %s64_s1 }
  0x1e   :  { %s632_s22 = scalar_lea.vmem %s51_s20, 1024  ;;  %p637_p11 = scmp.lt.s32.totalorder %s51_s20, %s51_s20 }
  0x1f   :  { %p633_p10 = scmp.ne.s32.totalorder %s51_s20, %s632_s22  ;;  %p638_p12 = scmp.lt.s32.totalorder %s632_s22, %s632_s22 }
  0x21   :  { %p639_p13 = por %p638_p12, %p637_p11 }
  0x23   :  { %p640_p0 = pnand %p639_p13, %p633_p10 }
  0x25   :  { %643 = shalt.err (!%p640_p0)
}
  0x26   :  { %56 = dma.hbm_to_vmem [thread:$0]  %s838_s3, 1024, %s51_s20, [#allocation6], %s715_s30, %s715_s30, %s716_s9  }
  0x27   :  { %s652_s0 = scalar_lea.vmem %s65_s1, 1024  ;;  %p657_p2 = scmp.lt.s32.totalorder %s65_s1, %s65_s1 }
  0x28   :  { %p653_p1 = scmp.ne.s32.totalorder %s65_s1, %s652_s0  ;;  %p658_p3 = scmp.lt.s32.totalorder %s652_s0, %s652_s0 }
  0x2a   :  { %p659_p4 = por %p658_p3, %p657_p2 }
  0x2c   :  { %p660_p5 = pnand %p659_p4, %p653_p1 }
  0x2e   :  { %663 = shalt.err (!%p660_p5)
}
  0x2f   :  { %70 = dma.hbm_to_vmem [thread:$0]  %s840_s5, 1024, %s65_s1, [#allocation9], %s715_s30, %s715_s30, %s716_s9  }
  0x30   :  { %704 = dma.done.wait [#allocation3], 256  }
  0x31   :  { %705 = vsyncadd [#allocation3], 4294967040 }
  0x32   :  { %706 = dma.done.wait [#allocation6], 1152  }
  0x33   :  { %707 = vsyncadd [#allocation6], 4294966144 }
  0x34   :  { %708 = dma.done.wait [#allocation9], 1024  }
  0x35   :  { %709 = vsyncadd [#allocation9], 4294966272  ;;  %v722_v0 = vmov 0.0   ;;  %vm723_vm0 = vmmov 0   ;;  %v567_v1 = vld [vmem:[#allocation5] sm:$0xff]   ;;  %v86_v2 = vld [vmem:[#allocation2] sm:$0xff]  ;;  %v389_v41 = vlaneseq }
  0x36   :  { %506 = vmatprep.subr.bf16.mxu0 %v722_v0  ;;  %508 = vmatprep.mubr.msk.bf16.mxu0 %vm723_vm0, %v722_v0  ;;  %v87_v3 = vld [vmem:[#allocation2 + $0x8] sm:$0xff]  ;;  %vm104_vm1 = vcmask 130048   ;;  %v568_v5 = vld [vmem:[#allocation7 + $0x38] sm:$0xff]   ;;  %v570_v7 = vld [vmem:[#allocation7 + $0x28] sm:$0xff]   ;;  %vm408_vm3 = vcmask 7168  }
  0x37   :  { %512 = vmatprep.subr.bf16.mxu1 %v722_v0  ;;  %528 = vmatprep.mubr.msk.bf16.mxu1 %vm723_vm0, %v722_v0  ;;  %v88_v4 = vpack.c.bf16 %v87_v3, %v86_v2  ;;  %v569_v6 = vld [vmem:[#allocation7 + $0x30] sm:$0xff]   ;;  %v571_v8 = vld [vmem:[#allocation7 + $0x20] sm:$0xff]   ;;  %v572_v9 = vld [vmem:[#allocation7 + $0x18] sm:$0xff]   ;;  %v390_v42 = vshrl.u32 %v389_v41, 7 }
  0x38   :  { %507 = vmatpush3.bf16.msra.mxu0 %v567_v1  ;;  %513 = vmatpush3.bf16.msra.mxu1 %v568_v5  ;;  %v573_v10 = vld [vmem:[#allocation7 + $0x10] sm:$0xff]   ;;  %v574_v11 = vld [vmem:[#allocation7 + $0x8] sm:$0xff]   ;;  %v575_v12 = vld [vmem:[#allocation7] sm:$0xff]  }
  0x39   :  { %532 = vmatprep.subr.bf16.mxu0 %v722_v0  ;;  %514 = vmatprep.subr.bf16.mxu1 %v722_v0  ;;  %v576_v13 = vld [vmem:[#allocation8 + $0x38] sm:$0xff]   ;;  %v577_v14 = vld [vmem:[#allocation8 + $0x30] sm:$0xff]   ;;  %v578_v15 = vld [vmem:[#allocation8 + $0x28] sm:$0xff]   ;;  %vm396_vm2 = vcmp.lt.s32.totalorder %v390_v42, 2 }
  0x3a   :  { %v579_v16 = vld [vmem:[#allocation8 + $0x20] sm:$0xff]   ;;  %v580_v17 = vld [vmem:[#allocation8 + $0x18] sm:$0xff]   ;;  %v456_v18 = vld [vmem:[%s837_s2] ss:$0 sm:$0xff] }
  0x3b   :  { %509 = vmatmul.mubr.msk.bf16.vlgmr.msra.gmra.mxu0 %vm104_vm1, %v88_v4  ;;  %v581_v28 = vld [vmem:[#allocation8 + $0x10] sm:$0xff]   ;;  %v582_v29 = vld [vmem:[#allocation8 + $0x8] sm:$0xff]   ;;  %v583_v30 = vld [vmem:[#allocation8] sm:$0xff]  }
  0x3c   :  { %548 = vmatprep.mubr.msk.bf16.mxu0 %vm723_vm0, %v722_v0  ;;  %515 = vmatpush3.bf16.msra.mxu1 %v569_v6  ;;  %v459_v31 = vld [vmem:[%s839_s4] ss:$0 sm:$0xff]  ;;  %s724_s4 = smov 124  }
  0x3d   :  { %516 = vmatprep.subr.bf16.mxu1 %v722_v0  ;;  %533 = vmatpush3.bf16.msra.mxu0 %v576_v13  ;;  %v468_v43 = vld [vmem:[%s841_s6] ss:$0 sm:$0xff]  ;;  %s725_s6 = smov [#allocation10]  }
  0x3e   :  { %534 = vmatprep.subr.bf16.mxu0 %v722_v0  ;;  %s428_s10 = sshll.u32 %s725_s6, 4  ;;  %s429_s10 = int_to_ptr.vmem [resolvable:$true] %s428_s10 }
  0x3f   :  { %s664_s11 = scalar_lea.vmem %s429_s10, 128  ;;  %p669_p7 = scmp.lt.s32.totalorder %s429_s10, %s429_s10 }
  0x40   :  { %517 = vmatpush3.bf16.msra.mxu1 %v570_v7  ;;  %p665_p6 = scmp.ne.s32.totalorder %s429_s10, %s664_s11  ;;  %p670_p8 = scmp.lt.s32.totalorder %s664_s11, %s664_s11 }
  0x41   :  { %518 = vmatprep.subr.bf16.mxu1 %v722_v0  ;;  %535 = vmatpush3.bf16.msra.mxu0 %v577_v14 }
  0x42   :  { %536 = vmatprep.subr.bf16.mxu0 %v722_v0  ;;  %p671_p9 = por %p670_p8, %p669_p7 }
  0x44   :  { %519 = vmatpush3.bf16.msra.mxu1 %v571_v8  ;;  %p672_p10 = pnand %p671_p9, %p665_p6 }
  0x45   :  { %520 = vmatprep.subr.bf16.mxu1 %v722_v0  ;;  %537 = vmatpush3.bf16.msra.mxu0 %v578_v15 }
  0x46   :  { %538 = vmatprep.subr.bf16.mxu0 %v722_v0 }
  0x48   :  { %521 = vmatpush3.bf16.msra.mxu1 %v572_v9 }
  0x49   :  { %522 = vmatprep.subr.bf16.mxu1 %v722_v0  ;;  %539 = vmatpush3.bf16.msra.mxu0 %v579_v16 }
  0x4a   :  { %540 = vmatprep.subr.bf16.mxu0 %v722_v0 }
  0x4c   :  { %523 = vmatpush3.bf16.msra.mxu1 %v573_v10 }
  0x4d   :  { %524 = vmatprep.subr.bf16.mxu1 %v722_v0  ;;  %541 = vmatpush3.bf16.msra.mxu0 %v580_v17 }
  0x4e   :  { %542 = vmatprep.subr.bf16.mxu0 %v722_v0 }
  0x50   :  { %525 = vmatpush3.bf16.msra.mxu1 %v574_v11 }
  0x51   :  { %526 = vmatprep.subr.bf16.mxu1 %v722_v0  ;;  %543 = vmatpush3.bf16.msra.mxu0 %v581_v28 }
  0x52   :  { %544 = vmatprep.subr.bf16.mxu0 %v722_v0 }
  0x54   :  { %527 = vmatpush3.bf16.msra.mxu1 %v575_v12 }
  0x55   :  { %545 = vmatpush3.bf16.msra.mxu0 %v582_v29 }
  0x56   :  { %546 = vmatprep.subr.bf16.mxu0 %v722_v0 }
  0x59   :  { %547 = vmatpush3.bf16.msra.mxu0 %v583_v30 }
  0xfb   :  { %v142_v19 = vpop.f32.mrf.mxu0 }
  0xfc   :  { %v143_v21 = vadd.f32 %v456_v18, %v142_v19 }
  0xfd   :  { %v510_v20 = vpop.f32.mrf.mxu0 }
  0xfe   :  { %v149_v25 = vmax.f32 %v143_v21, 0.0 }
  0xff   :  { %v145_v22 = vpop.f32.mrf.mxu0 }
 0x100   :  { %v146_v23 = vadd.f32 %v456_v18, %v145_v22 }
 0x101   :  { %v511_v24 = vpop.f32.mrf.mxu0 }
 0x102   :  { %v150_v26 = vmax.f32 %v146_v23, 0.0 }
 0x104   :  { %v151_v27 = vpack.c.bf16 %v150_v26, %v149_v25 }
 0x106   :  { %529 = vmatmul.mubr.bf16.vlgmr.msra.gmra.mxu1 %v151_v27 }
 0x1c6   :  { %v257_v32 = vpop.f32.mrf.mxu1 }
 0x1c7   :  { %v258_v34 = vadd.f32 %v459_v31, %v257_v32 }
 0x1c8   :  { %v530_v33 = vpop.f32.mrf.mxu1 }
 0x1c9   :  { %v264_v38 = vmax.f32 %v258_v34, 0.0 }
 0x1ca   :  { %v260_v35 = vpop.f32.mrf.mxu1 }
 0x1cb   :  { %v261_v36 = vadd.f32 %v459_v31, %v260_v35 }
 0x1cc   :  { %v531_v37 = vpop.f32.mrf.mxu1 }
 0x1cd   :  { %v265_v39 = vmax.f32 %v261_v36, 0.0 }
 0x1cf   :  { %v266_v40 = vpack.c.bf16 %v265_v39, %v264_v38 }
 0x1d1   :  { %549 = vmatmul.mubr.bf16.vlgmr.msra.gmra.mxu0 %v266_v40 }
 0x291   :  { %v372_v44 = vpop.f32.mrf.mxu0 }
 0x292   :  { %v373_v45 = vadd.f32 %v468_v43, %v372_v44 }
 0x293   :  { %v550_v46 = vpop.f32.mrf.mxu0 }
 0x294   :  { %v398_v47 = vsel %vm396_vm2, %v373_v45, 0.0 }
 0x295   :  { %402 = vrot.lane.b32.xlu0 %v398_v47, %s724_s4  ;;  %v375_v48 = vpop.f32.mrf.mxu0 }
 0x296   :  { %v376_v49 = vadd.f32 %v468_v43, %v375_v48 }
 0x297   :  { %v551_v50 = vpop.f32.mrf.mxu0 }
 0x298   :  { %v484_v51 = vpack.c.bf16 %v376_v49, %v373_v45 }
 0x299   :  { %404 = vrot.lane.b32.xlu0 %v722_v0, %s724_s4 }
 0x29a   :  { %485 = vst [vmem:[#allocation10] sm:$0xff] %v484_v51  }
 0x307   :  { %v403_v52 = vpop.permute.xlu0 %402 }
 0x308   :  { %v409_v54 = vsel %vm408_vm3, %v403_v52, 0.0 }
 0x30b   :  { %v405_v53 = vpop.permute.xlu0 %404 }
 0x30c   :  { %v410_v55 = vsel %vm408_vm3, %v405_v53, 0.0 }
 0x30d   :  { %v411_v56 = vadd.f32 %v410_v55, %v409_v54 }
 0x30f   :  { %412 = vadd.xlane.f32.xlu1 %v411_v56 }
 0x310   :  { %675 = shalt.err (!%p672_p10)
}
 0x311   :  { %434 = dma.vmem_to_hbm [thread:$0]  %s429_s10, 128, %s842_s7, [#allocation4], %s715_s30, %s715_s30, %s716_s9  }
 0x312   :  { %s726_s14 = smov [#allocation11]  }
 0x313   :  { %s441_s15 = sshll.u32 %s726_s14, 4  ;;  %s442_s15 = int_to_ptr.vmem [resolvable:$true] %s441_s15 }
 0x314   :  { %s684_s17 = scalar_lea.vmem %s442_s15, 16  ;;  %s688_s18 = scalar_lea.vmem %s442_s15, 32 }
 0x315   :  { %p685_p11 = scmp.ne.s32.totalorder %s442_s15, %s684_s17  ;;  %p689_p12 = scmp.lt.s32.totalorder %s442_s15, %s442_s15 }
 0x316   :  { %p690_p13 = scmp.lt.s32.totalorder %s688_s18, %s684_s17 }
 0x318   :  { %p691_p0 = por %p690_p13, %p689_p12 }
 0x31a   :  { %p692_p1 = pnand %p691_p0, %p685_p11 }
 0x398   :  { %v413_v57 = vpop.xlane.xlu1 %412 }
 0x399   :  { %v414_v58 = vrot.slane %v413_v57, 4 }
 0x39b   :  { %v415_v59 = vadd.f32 %v414_v58, %v413_v57 }
 0x39d   :  { %v416_v60 = vrot.slane %v415_v59, 2 }
 0x39f   :  { %v417_v61 = vadd.f32 %v416_v60, %v415_v59 }
 0x3a1   :  { %v418_v62 = vrot.slane %v417_v61, 1 }
 0x3a3   :  { %v419_v63 = vadd.f32 %v418_v62, %v417_v61 }
 0x3a5   :  { %552 = vpush %v419_v63 }
 0x3d6   :  { %s553_s16 = spop %552 }
 0x3d7   :  { %v421_v0 = vstv %s553_s16 }
 0x3d8   :  { %422 = vst [vmem:[#allocation11] sm:$0x1] %v421_v0 }
 0x3d9   :  { %695 = shalt.err (!%p692_p1)
}
 0x3da   :  { %444 = dma.vmem_to_hbm [thread:$0]  %s442_s15, 16, %s843_s8, [#allocation12]  }
 0x3db   :  { %710 = dma.done.wait [#allocation4], 128  }
 0x3dc   :  { %711 = vsyncadd [#allocation4], 4294967168 }
 0x3dd   :  { %712 = dma.done.wait [#allocation12], 16  }
 0x3de   :  { %713 = vsyncadd [#allocation12], 4294967280 }
 0x3df   :  { %451 = vsyncpa [#allocation3], 1 }
 0x3e0   :  { %452 = vsyncpa [#allocation6], 1 }
 0x3e1   :  { %453 = vsyncpa [#allocation9], 1 }
 0x3e2   :  { %454 = vsyncpa [#allocation4], 1 }
 0x3e3   :  { %455 = vsyncpa [#allocation12], 1 }

</bundles_post_ra>
